<compile_context>
chip_gen: v6e
topology: v6e:2x2x1
jax: 0.10.0
libtpu: 0.0.40
codegen_flags: <defaults>
</compile_context>

<pallas_src>
import jax
import jax.numpy as jnp
from jax import lax
from jax.experimental import pallas as pl
from jax.experimental.pallas import tpu as pltpu

EPS = 1e-5
_VMEM_LIMIT = 32 * 1024 * 1024  # safe on v5e/v6e/v7x; tiles here are tiny


def _conv_stats_kernel(x_ref, w_ref, conv_ref, stats_ref):
    """Pass 1: conv for one row-tile + partial BN statistics.

    x_ref     : (tile_h + 2, (W+2)*Cin)   row block incl. halo, lanes = (w_in, cin)
    w_ref     : (3, (W+2)*Cin, W*Cout)    banded weights, one slab per kh
    conv_ref  : (tile_h, W*Cout)          f32 conv output, lanes = (w_out, cout)
    stats_ref : (2, W*Cout)               partial [sum; sum_of_squares] over rows
    """
    th = conv_ref.shape[0]
    acc = jnp.zeros(conv_ref.shape, jnp.float32)
    # 3x3 conv as 3 matmuls (kw taps + Cin fused into the contraction dim).
    for kh in range(3):  # static unroll
        acc = acc + jnp.dot(
            x_ref[kh:kh + th, :], w_ref[kh],
            preferred_element_type=jnp.float32,
        )
    conv_ref[...] = acc
    # One-pass statistics (E[x], E[x^2] finalized outside); reduction over the
    # W groups of lanes is done in the tiny plain-JAX glue between passes.
    stats_ref[0:1, :] = jnp.sum(acc, axis=0, keepdims=True)
    stats_ref[1:2, :] = jnp.sum(acc * acc, axis=0, keepdims=True)


def _norm_relu_kernel(conv_ref, scale_ref, shift_ref, o_ref):
    """Pass 2: y = max(conv * scale + shift, 0), all lane-dense."""
    y = conv_ref[...] * scale_ref[...] + shift_ref[...]
    o_ref[...] = jnp.maximum(y, 0.0).astype(o_ref.dtype)


def conv_norm_relu(x_nchw, w_oihw, bias, gamma, beta, *,
                   tile_h=8, matmul_dtype=jnp.bfloat16):
    """Forward pass matching torch ConvNormRelu (training-mode BN).

    x_nchw : (N, Cin, H, W) f32       w_oihw : (Cout, Cin, 3, 3) f32
    bias   : (Cout,) f32 (unused: cancelled exactly by BN mean subtraction)
    gamma, beta : (Cout,) f32
    returns (N, Cout, H, W) f32
    """
    del bias  # redundant before training-mode BatchNorm
    N, Cin, H, W = x_nchw.shape
    Cout = w_oihw.shape[0]
    assert H % tile_h == 0, "tile_h must divide H"
    n_hb = H // tile_h
    num_tiles = N * n_hb
    wc_in = (W + 2) * Cin
    wc_out = W * Cout

    # ---------------- wrapper glue (plain JAX, layout only) -----------------
    # NCHW -> NHWC, zero halo pad, fold (w, cin) into lanes.
    x_nhwc = jnp.transpose(x_nchw, (0, 2, 3, 1))
    x_pad = jnp.pad(x_nhwc, ((0, 0), (1, 1), (1, 1), (0, 0)))
    x_rows = x_pad.reshape(N, H + 2, wc_in)
    # Overlapping row blocks with their 2-row halo: (num_tiles, tile_h+2, wc_in).
    row_idx = (jnp.arange(n_hb)[:, None] * tile_h
               + jnp.arange(tile_h + 2)[None, :])
    x_blocks = x_rows[:, row_idx, :].reshape(num_tiles, tile_h + 2, wc_in)
    x_blocks = x_blocks.astype(matmul_dtype)

    # Banded weight slabs: T[kh, wi*Cin+ci, wo*Cout+co] = w[kh, wi-wo, ci, co]
    # for 0 <= wi - wo <= 2, else 0.
    w_hwio = jnp.transpose(w_oihw, (2, 3, 1, 0))  # (3, 3, Cin, Cout)
    wi = jnp.arange(W + 2)[:, None]
    wo = jnp.arange(W)[None, :]
    onehot = (wi == wo + jnp.arange(3)[:, None, None]).astype(jnp.float32)  # (3,W+2,W)
    t_w = jnp.einsum("kiw,hkcd->hicwd", onehot, w_hwio)  # (3, W+2, Cin, W, Cout)
    t_w = t_w.reshape(3, wc_in, wc_out).astype(matmul_dtype)

    # ------------------- pass 1: conv + partial statistics ------------------
    conv_slab, partial_stats = pl.pallas_call(
        _conv_stats_kernel,
        out_shape=(
            jax.ShapeDtypeStruct((N * H, wc_out), jnp.float32),
            jax.ShapeDtypeStruct((num_tiles, 2, wc_out), jnp.float32),
        ),
        grid=(num_tiles,),
        in_specs=[
            pl.BlockSpec((None, tile_h + 2, wc_in), lambda t: (t, 0, 0)),
            pl.BlockSpec((3, wc_in, wc_out), lambda t: (0, 0, 0)),
        ],
        out_specs=(
            pl.BlockSpec((tile_h, wc_out), lambda t: (t, 0)),
            pl.BlockSpec((None, 2, wc_out), lambda t: (t, 0, 0)),
        ),
        compiler_params=pltpu.CompilerParams(
            dimension_semantics=("parallel",),
            vmem_limit_bytes=_VMEM_LIMIT,
        ),
    )(x_blocks, t_w)

    # --------------- tiny glue: finalize BN scale/shift (O(Cout)) -----------
    m = N * H * W
    sums = jnp.sum(partial_stats, axis=0).reshape(2, W, Cout).sum(axis=1)  # (2,Cout)
    mean = sums[0] / m
    var = sums[1] / m - mean * mean          # biased, training-mode BN
    inv = lax.rsqrt(var + EPS)
    scale_c = gamma * inv
    shift_c = beta - mean * scale_c
    scale_row = jnp.tile(scale_c, W).reshape(1, wc_out)  # folded (w, cout) lanes
    shift_row = jnp.tile(shift_c, W).reshape(1, wc_out)

    # ---------------------- pass 2: normalize + ReLU ------------------------
    out_slab = pl.pallas_call(
        _norm_relu_kernel,
        out_shape=jax.ShapeDtypeStruct((N * H, wc_out), jnp.float32),
        grid=(N * H // tile_h,),
        in_specs=[
            pl.BlockSpec((tile_h, wc_out), lambda i: (i, 0)),
            pl.BlockSpec((1, wc_out), lambda i: (0, 0)),
            pl.BlockSpec((1, wc_out), lambda i: (0, 0)),
        ],
        out_specs=pl.BlockSpec((tile_h, wc_out), lambda i: (i, 0)),
        compiler_params=pltpu.CompilerParams(
            dimension_semantics=("parallel",),
            vmem_limit_bytes=_VMEM_LIMIT,
        ),
    )(conv_slab, scale_row, shift_row)

    return out_slab.reshape(N, H, W, Cout).transpose(0, 3, 1, 2)  # -> NCHW


def _reference(x_nchw, w_oihw, bias, gamma, beta):
    """Plain-JAX reference of the same forward (for verification)."""
    x_nhwc = jnp.transpose(x_nchw, (0, 2, 3, 1))
    w_hwio = jnp.transpose(w_oihw, (2, 3, 1, 0))
    conv = lax.conv_general_dilated(
        x_nhwc, w_hwio, window_strides=(1, 1), padding="SAME",
        dimension_numbers=("NHWC", "HWIO", "NHWC"),
    ) + bias
    mean = jnp.mean(conv, axis=(0, 1, 2), keepdims=True)
    var = jnp.mean((conv - mean) ** 2, axis=(0, 1, 2), keepdims=True)
    y = (conv - mean) * lax.rsqrt(var + EPS) * gamma + beta
    y = jnp.maximum(y, 0.0)
    return jnp.transpose(y, (0, 3, 1, 2))


if __name__ == "__main__":
    N, Cin, Cout, H, W = 2, 4, 8, 16, 16

    key = jax.random.PRNGKey(0)
    kx, kw, kb = jax.random.split(key, 3)
    x = jax.random.normal(kx, (N, Cin, H, W), dtype=jnp.float32)
    w = jax.random.normal(kw, (Cout, Cin, 3, 3), dtype=jnp.float32) * 0.1
    b = jax.random.normal(kb, (Cout,), dtype=jnp.float32) * 0.1
    gamma = jnp.ones((Cout,), dtype=jnp.float32)   # BN weight init
    beta = jnp.zeros((Cout,), dtype=jnp.float32)   # BN bias init

    ref = _reference(x, w, b, gamma, beta)

    # Exact-precision path (f32 MXU inputs, e.g. v5e): tight tolerance.
    out_f32 = jax.block_until_ready(
        conv_norm_relu(x, w, b, gamma, beta, matmul_dtype=jnp.float32))
    assert out_f32.shape == (N, Cout, H, W)
    assert jnp.allclose(out_f32, ref, atol=1e-4, rtol=1e-4), "f32 mismatch"

    # bf16 MXU-input path (v6e/v7x optimization, f32 accumulation): loose tol.
    out_bf16 = jax.block_until_ready(
        conv_norm_relu(x, w, b, gamma, beta, matmul_dtype=jnp.bfloat16))
    assert out_bf16.shape == (N, Cout, H, W)
    assert jnp.allclose(out_bf16, ref, atol=1e-1, rtol=1e-1), "bf16 mismatch"

    print("KERNEL_OK")
</pallas_src>

<mosaic_0001>
module attributes {stable_mosaic.version = 11 : i64} {
  func.func @_conv_stats_kernel(%arg0: i32, %arg1: memref<1x10x72xf32, #tpu.memory_space<vmem>>, %arg2: memref<3x72x128xf32, #tpu.memory_space<vmem>>, %arg3: memref<8x128xf32, #tpu.memory_space<vmem>>, %arg4: memref<1x2x128xf32, #tpu.memory_space<vmem>>) attributes {dimension_semantics = [#tpu.dimension_semantics<parallel>], iteration_bounds = array<i64: 4>, scalar_prefetch = 0 : i64, scratch_operands = 0 : i64, tpu.core_type = #tpu.core_type<tc>, window_params = [{transform_indices = @transform_0, window_bounds = array<i64: 1, 10, 72>}, {pipeline_mode = #tpu.pipeline_mode<synchronous>, transform_indices = @transform_1, window_bounds = array<i64: 3, 72, 128>}, {transform_indices = @transform_2, window_bounds = array<i64: 8, 128>}, {transform_indices = @transform_3, window_bounds = array<i64: 1, 2, 128>}]} {
    %cst = arith.constant 0.000000e+00 : f32
    %0 = vector.broadcast %cst : f32 to vector<8x128xf32>
    %c0 = arith.constant 0 : index
    %c0_0 = arith.constant 0 : index
    %c0_1 = arith.constant 0 : index
    %1 = vector.load %arg1[%c0, %c0_0, %c0_1] : memref<1x10x72xf32, #tpu.memory_space<vmem>>, vector<1x8x72xf32>
    %2 = vector.shape_cast %1 : vector<1x8x72xf32> to vector<8x72xf32>
    %c0_2 = arith.constant 0 : index
    %c0_3 = arith.constant 0 : index
    %c0_4 = arith.constant 0 : index
    %3 = vector.load %arg2[%c0_2, %c0_3, %c0_4] : memref<3x72x128xf32, #tpu.memory_space<vmem>>, vector<1x72x128xf32>
    %4 = vector.shape_cast %3 : vector<1x72x128xf32> to vector<72x128xf32>
    %cst_5 = arith.constant dense<0.000000e+00> : vector<8x128xf32>
    %5 = tpu.matmul %2, %4, %cst_5 {dimension_numbers = #tpu.dot_dimension_numbers<[1], [0], [0], [1], [0, 0, 1, 1], [], []>} : vector<8x72xf32>, vector<72x128xf32>, vector<8x128xf32> -> vector<8x128xf32>
    %6 = arith.addf %0, %5 : vector<8x128xf32>
    %c0_6 = arith.constant 0 : index
    %c1 = arith.constant 1 : index
    %c0_7 = arith.constant 0 : index
    %7 = vector.load %arg1[%c0_6, %c1, %c0_7] : memref<1x10x72xf32, #tpu.memory_space<vmem>>, vector<1x8x72xf32>
    %8 = vector.shape_cast %7 : vector<1x8x72xf32> to vector<8x72xf32>
    %c1_8 = arith.constant 1 : index
    %c0_9 = arith.constant 0 : index
    %c0_10 = arith.constant 0 : index
    %9 = vector.load %arg2[%c1_8, %c0_9, %c0_10] : memref<3x72x128xf32, #tpu.memory_space<vmem>>, vector<1x72x128xf32>
    %10 = vector.shape_cast %9 : vector<1x72x128xf32> to vector<72x128xf32>
    %cst_11 = arith.constant dense<0.000000e+00> : vector<8x128xf32>
    %11 = tpu.matmul %8, %10, %cst_11 {dimension_numbers = #tpu.dot_dimension_numbers<[1], [0], [0], [1], [0, 0, 1, 1], [], []>} : vector<8x72xf32>, vector<72x128xf32>, vector<8x128xf32> -> vector<8x128xf32>
    %12 = arith.addf %6, %11 : vector<8x128xf32>
    %c0_12 = arith.constant 0 : index
    %c2 = arith.constant 2 : index
    %c0_13 = arith.constant 0 : index
    %13 = vector.load %arg1[%c0_12, %c2, %c0_13] : memref<1x10x72xf32, #tpu.memory_space<vmem>>, vector<1x8x72xf32>
    %14 = vector.shape_cast %13 : vector<1x8x72xf32> to vector<8x72xf32>
    %c2_14 = arith.constant 2 : index
    %c0_15 = arith.constant 0 : index
    %c0_16 = arith.constant 0 : index
    %15 = vector.load %arg2[%c2_14, %c0_15, %c0_16] : memref<3x72x128xf32, #tpu.memory_space<vmem>>, vector<1x72x128xf32>
    %16 = vector.shape_cast %15 : vector<1x72x128xf32> to vector<72x128xf32>
    %cst_17 = arith.constant dense<0.000000e+00> : vector<8x128xf32>
    %17 = tpu.matmul %14, %16, %cst_17 {dimension_numbers = #tpu.dot_dimension_numbers<[1], [0], [0], [1], [0, 0, 1, 1], [], []>} : vector<8x72xf32>, vector<72x128xf32>, vector<8x128xf32> -> vector<8x128xf32>
    %18 = arith.addf %12, %17 : vector<8x128xf32>
    %c0_18 = arith.constant 0 : index
    %c0_19 = arith.constant 0 : index
    %19 = vector.load %arg3[%c0_18, %c0_19] : memref<8x128xf32, #tpu.memory_space<vmem>>, vector<8x128xf32>
    tpu.vector_store %arg3[%c0_18, %c0_19], %18 {strides = array<i32>} : memref<8x128xf32, #tpu.memory_space<vmem>>, vector<8x128xf32>,
    %cst_20 = arith.constant dense<0.000000e+00> : vector<128xf32>
    %20 = vector.multi_reduction <add>, %18, %cst_20 [0] : vector<8x128xf32> to vector<128xf32>
    %21 = vector.shape_cast %20 : vector<128xf32> to vector<1x128xf32>
    %c0_21 = arith.constant 0 : index
    %c0_22 = arith.constant 0 : index
    %c0_23 = arith.constant 0 : index
    %22 = vector.load %arg4[%c0_21, %c0_22, %c0_23] : memref<1x2x128xf32, #tpu.memory_space<vmem>>, vector<1x1x128xf32>
    %23 = vector.shape_cast %22 : vector<1x1x128xf32> to vector<1x128xf32>
    %24 = vector.shape_cast %21 : vector<1x128xf32> to vector<1x1x128xf32>
    tpu.vector_store %arg4[%c0_21, %c0_22, %c0_23], %24 {strides = array<i32>} : memref<1x2x128xf32, #tpu.memory_space<vmem>>, vector<1x1x128xf32>,
    %25 = arith.mulf %18, %18 : vector<8x128xf32>
    %cst_24 = arith.constant dense<0.000000e+00> : vector<128xf32>
    %26 = vector.multi_reduction <add>, %25, %cst_24 [0] : vector<8x128xf32> to vector<128xf32>
    %27 = vector.shape_cast %26 : vector<128xf32> to vector<1x128xf32>
    %c0_25 = arith.constant 0 : index
    %c1_26 = arith.constant 1 : index
    %c0_27 = arith.constant 0 : index
    %28 = vector.load %arg4[%c0_25, %c1_26, %c0_27] : memref<1x2x128xf32, #tpu.memory_space<vmem>>, vector<1x1x128xf32>
    %29 = vector.shape_cast %28 : vector<1x1x128xf32> to vector<1x128xf32>
    %30 = vector.shape_cast %27 : vector<1x128xf32> to vector<1x1x128xf32>
    tpu.vector_store %arg4[%c0_25, %c1_26, %c0_27], %30 {strides = array<i32>} : memref<1x2x128xf32, #tpu.memory_space<vmem>>, vector<1x1x128xf32>,
    return
  }
  func.func @transform_0(%arg0: i32) -> (i32, i32, i32) {
    %c0_i32 = arith.constant 0 : i32
    %c0_i32_0 = arith.constant 0 : i32
    %c0_i32_1 = arith.constant 0 : i32
    return %arg0, %c0_i32, %c0_i32_0 : i32, i32, i32
  }
  func.func @transform_1(%arg0: i32) -> (i32, i32, i32) {
    %c0_i32 = arith.constant 0 : i32
    %c0_i32_0 = arith.constant 0 : i32
    %c0_i32_1 = arith.constant 0 : i32
    %c0_i32_2 = arith.constant 0 : i32
    return %c0_i32, %c0_i32_0, %c0_i32_1 : i32, i32, i32
  }
  func.func @transform_2(%arg0: i32) -> (i32, i32) {
    %c0_i32 = arith.constant 0 : i32
    %c0_i32_0 = arith.constant 0 : i32
    return %arg0, %c0_i32 : i32, i32
  }
  func.func @transform_3(%arg0: i32) -> (i32, i32, i32) {
    %c0_i32 = arith.constant 0 : i32
    %c0_i32_0 = arith.constant 0 : i32
    %c0_i32_1 = arith.constant 0 : i32
    return %arg0, %c0_i32, %c0_i32_0 : i32, i32, i32
  }
}

</mosaic_0001>

<bundles_post_ra>
// kernel: tpu_custom_call.1
= control target key start
LH: loop header
LB: loop body
LE: loop exit
PB: predicated region body
PF: predicated region fallthrough
CT: control target
= control target key end

     0   :  { %9 = vsyncpa [#allocation3], 0  ;;  %s1100_s0 = inlined_call_operand.vmem [shape: f32[4,10,72], index: 0, kind: input, shape index: {}]   ;;  %s1101_s1 = inlined_call_operand.hbm [shape: f32[3,72,128], index: 1, kind: input, shape index: {}]   ;;  %s1102_s2 = inlined_call_operand.hbm [shape: f32[32,128], index: 2, kind: output, shape index: {0}]   ;;  %s1103_s3 = inlined_call_operand.hbm [shape: f32[4,2,128], index: 3, kind: output, shape index: {1}]  }
   0x1   :  { %10 = vsyncpa [#allocation4], 0 }
   0x2   :  { %12 = vsyncpa [#allocation4 + $0x1], 0 }
   0x3   :  { %13 = vsyncpa [#allocation7], 0 }
   0x4   :  { %15 = vsyncpa [#allocation7 + $0x1], 0  ;;  %s920_s12 = smov 0   ;;  %s922_s13 = smov 0  }
   0x5   :  { %s924_s14 = smov 0   ;;  %s926_s15 = smov 0  }
   0x6 LB: > { %s941_s16 = sadd.s32 4294967295, %s891_s15   ;;  %s599_s17 = sadd.s32 4294967294, %s891_s15   ;;  %s891_s15 = sphi %s926_s15, %s1111_s15   ;;  %s887_s14 = sphi %s924_s14, %s1110_s14   ;;  %s883_s13 = sphi %s922_s13, %s1109_s13   ;;  %s879_s12 = sphi %s920_s12, %s1108_s12  }
   0x7   : > { %s945_s18 = sadd.s32 1, %s891_s15   ;;  %s75_s19 = sadd.s32 1, %s887_s14 }
   0x8   : > { %s72_s20 = ssub.s32 %s891_s15, %s945_s18  ;;  %p85_p0 = scmp.ne.s32.totalorder %s887_s14, %s883_s13 }
   0x9   : > { %p73_p1 = scmp.eq.s32.totalorder %s72_s20, 0  ;;  %p86_p2 = scmp.eq.s32.totalorder %s941_s16, 3 }
   0xa   : > { %p91_p3 = scmp.ne.s32.totalorder %s883_s13, %s879_s12  ;;  %p92_p4 = scmp.eq.s32.totalorder %s599_s17, 3 }
   0xb   : > { %s956_s21 = scalar_select %p73_p1, %s887_s14, %s75_s19  }
   0xc   : > { %p958_p5 = por %p86_p2, %p85_p0  ;;  %p962_p6 = por %p92_p4, %p91_p3 }
   0xd   : > { %p600_p7 = scmp.ge.s32.totalorder %s891_s15, 1  ;;  %p125_p8 = scmp.lt.s32.totalorder %s891_s15, 5 }
   0xe   : > { %s1105_s23 = scalar_select %p962_p6, 1, 0 }
   0xf   : > { %p731_p9 = scmp.eq.s32.totalorder %s941_s16, 0  ;;  %p969_p10 = pnand %p600_p7, %p125_p8 }
  0x10   : > { %s893_s25 = smov [#allocation2]  }
  0x11   : > { %s137_s26 = sshll.u32 %s893_s25, 4  ;;  %p720_p11 = pneg %p969_p10  ;;  %s138_s26 = int_to_ptr.vmem [resolvable:$true] %s137_s26 }
  0x12   : > { %s782_s27 = scalar_lea.vmem %s138_s26, 3456  ;;  %p790_p3 = scmp.lt.s32.totalorder %s138_s26, %s138_s26 }
  0x13   : > { %p721_p12 = pnand %p731_p9, %p720_p11  ;;  %p783_p0 = scmp.ne.s32.totalorder %s138_s26, %s782_s27 }
  0x14   : > { %p791_p4 = scmp.lt.s32.totalorder %s782_s27, %s782_s27 }
  0x15   : > { %p773_p13 = pneg %p721_p12 }
  0x16   : > { %p792_p6 = por %p791_p4, %p790_p3 }
  0x17   : > { %p785_p1 = pnand %p783_p0, %p773_p13 }
  0x19   : > { %p786_p2 = pneg %p785_p1 }
  0x1b   : > { %p793_p7 = pnand %p792_p6, %p786_p2 }
  0x1d   : > { %796 = shalt.err (!%p793_p7)
}
  0x1e   : > { %s894_s28 = smov 128   ;;  %s895_s29 = smov 8  }
  0x1f   : > { %723 = dma.hbm_to_vmem [thread:$0]  (!%p721_p12), %s1101_s1, 3456, %s138_s26, [#allocation3], %s894_s28, %s894_s28, %s895_s29  }
  0x20   : > { %161 = sbr.rel (%p969_p10) target bundleno = 308 (0x134), region = 28 }
  0x25   : > { %866 = dma.done.wait (%p731_p9), [#allocation3], 3456  }
  0x26   : > { %868 = vsyncadd (%p731_p9), [#allocation3], 4294963840  ;;  %v896_v0 = vmov 0.0   ;;  %vm897_vm0 = vmmov 0   ;;  %v215_v1 = vld [vmem:[#allocation2 + $0x88] sm:$0xff]  ;;  %v204_v2 = vld [vmem:[#allocation2 + $0x40] sm:$0xff] }
  0x27   : > { %649 = vmatprep.subr.mxu0 %v896_v0  ;;  %670 = vmatprep.subr.mxu1 %v896_v0  ;;  %v214_v3 = vld [vmem:[#allocation2 + $0x80] sm:$0xff]  ;;  %v203_v4 = vld [vmem:[#allocation2 + $0x38] sm:$0xff]  ;;  %p190_p6 = scmp.lt.s32.totalorder %s941_s16, 3  ;;  %v202_v6 = vld [vmem:[#allocation2 + $0x30] sm:$0xff]  ;;  %vm216_vm1 = vcmask 588800   ;;  %s1033_s10 = sand.u32 1, %s883_s13  }
  0x28   : > { %667 = vmatprep.mubr.msk.f32.mxu0 %vm897_vm0, %v896_v0  ;;  %688 = vmatprep.mubr.msk.f32.mxu1 %vm897_vm0, %v896_v0  ;;  %v213_v5 = vld [vmem:[#allocation2 + $0x78] sm:$0xff]  ;;  %v212_v7 = vld [vmem:[#allocation2 + $0x70] sm:$0xff]  ;;  %v201_v8 = vld [vmem:[#allocation2 + $0x28] sm:$0xff]  ;;  %s605_s11 = sshll.u32 %s1033_s10, 3  ;;  %s614_s17 = sshll.u32 %s941_s16, 7 }
  0x29   : > { %650 = vmatpush3.msra.mxu0 %v215_v1  ;;  %671 = vmatpush3.msra.mxu1 %v204_v2  ;;  %s191_s5 = scalar_select %p190_p6, %s941_s16, 3  ;;  %v211_v9 = vld [vmem:[#allocation2 + $0x68] sm:$0xff]  ;;  %v200_v10 = vld [vmem:[#allocation2 + $0x20] sm:$0xff]  ;;  %v199_v12 = vld [vmem:[#allocation2 + $0x18] sm:$0xff] }
  0x2a   : > { %651 = vmatprep.subr.mxu0 %v896_v0  ;;  %672 = vmatprep.subr.mxu1 %v896_v0  ;;  %v210_v11 = vld [vmem:[#allocation2 + $0x60] sm:$0xff]  ;;  %v209_v13 = vld [vmem:[#allocation2 + $0x58] sm:$0xff]  ;;  %v198_v14 = vld [vmem:[#allocation2 + $0x10] sm:$0xff]  ;;  %s182_s19 = scalar_lea.vmem [#allocation5], %s605_s11  ;;  %s1040_s26 = scalar_lea.hbm %s1102_s2, %s614_s17 }
  0x2b   : > { %652 = vmatpush3.msra.mxu0 %v214_v3  ;;  %673 = vmatpush3.msra.mxu1 %v203_v4  ;;  %s618_s6 = sshll.u32 %s191_s5, 4  ;;  %v208_v15 = vld [vmem:[#allocation2 + $0x50] sm:$0xff]  ;;  %v197_v16 = vld [vmem:[#allocation2 + $0x8] sm:$0xff]  ;;  %v196_v18 = vld [vmem:[#allocation2] sm:$0xff]  ;;  %s483_s20 = sshll.u32 %s182_s19, 4  ;;  %s1042_s20 = int_to_ptr.vmem [resolvable:$true] %s483_s20 }
  0x2c   : > { %653 = vmatprep.subr.mxu0 %v896_v0  ;;  %674 = vmatprep.subr.mxu1 %v896_v0  ;;  %s1009_s9 = scalar_lea.vmem %s1100_s0, %s618_s6  ;;  %v207_v17 = vld [vmem:[#allocation2 + $0x48] sm:$0xff]  ;;  %v373_v21 = vld [vmem:[#allocation2 + $0xd0] sm:$0xff]  ;;  %v371_v23 = vld [vmem:[#allocation2 + $0xc0] sm:$0xff]  ;;  %s465_s27 = scalar_lea.sflag [#allocation4], %s1033_s10 }
  0x2d   : > { %654 = vmatpush3.msra.mxu0 %v213_v5  ;;  %675 = vmatpush3.msra.mxu1 %v202_v6  ;;  %v205_v19 = vld [vmem:[%s1009_s9 + $0x1] sm:$0xff]  ;;  %v370_v24 = vld [vmem:[#allocation2 + $0xb8] sm:$0xff]  ;;  %v369_v25 = vld [vmem:[#allocation2 + $0xb0] sm:$0xff]  ;;  %s797_s28 = scalar_lea.vmem %s1042_s20, 128  ;;  %s898_s29 = smov [#allocation5]  }
  0x2e   : > { %655 = vmatprep.subr.mxu0 %v896_v0  ;;  %676 = vmatprep.subr.mxu1 %v896_v0  ;;  %v195_v20 = vld [vmem:[%s1009_s9] sm:$0xff]  ;;  %v372_v22 = vld [vmem:[#allocation2 + $0xc8] sm:$0xff]  ;;  %v366_v28 = vld [vmem:[#allocation2 + $0x98] sm:$0xff]  ;;  %p798_p8 = scmp.ne.s32.totalorder %s1042_s20, %s797_s28  ;;  %s801_s30 = sshll.u32 %s898_s29, 4  ;;  %s802_s30 = int_to_ptr.vmem [resolvable:$false] %s801_s30 }
  0x2f   : > { %656 = vmatpush3.msra.mxu0 %v212_v7  ;;  %677 = vmatpush3.msra.mxu1 %v201_v8  ;;  %v368_v26 = vld [vmem:[#allocation2 + $0xa8] sm:$0xff]  ;;  %v367_v27 = vld [vmem:[#allocation2 + $0xa0] sm:$0xff]  ;;  %v365_v29 = vld [vmem:[#allocation2 + $0x90] sm:$0xff]  ;;  %s803_s4 = scalar_lea.vmem %s802_s30, 256  ;;  %p804_p11 = scmp.lt.s32.totalorder %s1042_s20, %s802_s30 }
  0x30   : > { %657 = vmatprep.subr.mxu0 %v896_v0  ;;  %678 = vmatprep.subr.mxu1 %v896_v0  ;;  %v363_v30 = vld [vmem:[%s1009_s9 + $0x2] sm:$0xff]  ;;  %p799_p9 = pnand %p798_p8, %p958_p5  ;;  %p805_p12 = scmp.lt.s32.totalorder %s803_s4, %s797_s28 }
  0x31   : > { %658 = vmatpush3.msra.mxu0 %v211_v9  ;;  %679 = vmatpush3.msra.mxu1 %v200_v10 }
  0x32   : > { %659 = vmatprep.subr.mxu0 %v896_v0  ;;  %680 = vmatprep.subr.mxu1 %v896_v0  ;;  %p800_p10 = pneg %p799_p9  ;;  %p806_p13 = por %p805_p12, %p804_p11 }
  0x33   : > { %660 = vmatpush3.msra.mxu0 %v210_v11  ;;  %681 = vmatpush3.msra.mxu1 %v199_v12 }
  0x34   : > { %661 = vmatprep.subr.mxu0 %v896_v0  ;;  %682 = vmatprep.subr.mxu1 %v896_v0  ;;  %p807_p0 = pnand %p806_p13, %p800_p10 }
  0x35   : > { %662 = vmatpush3.msra.mxu0 %v209_v13  ;;  %683 = vmatpush3.msra.mxu1 %v198_v14 }
  0x36   : > { %663 = vmatprep.subr.mxu0 %v896_v0  ;;  %684 = vmatprep.subr.mxu1 %v896_v0 }
  0x37   : > { %664 = vmatpush3.msra.mxu0 %v208_v15  ;;  %685 = vmatpush3.msra.mxu1 %v197_v16 }
  0x38   : > { %665 = vmatprep.subr.mxu0 %v896_v0  ;;  %686 = vmatprep.subr.mxu1 %v896_v0 }
  0x39   : > { %666 = vmatpush3.msra.mxu0 %v207_v17  ;;  %687 = vmatpush3.msra.mxu1 %v196_v18 }
  0x3a   : > { %668 = vmatmul.mubr.msk.f32.vlgmr.msra.gmra.mxu0 %vm216_vm1, %v205_v19  ;;  %691 = vmatprep.subr.mxu0 %v896_v0 }
  0x3b   : > { %689 = vmatmul.mubr.msk.f32.vlgmr.msra.gmra.mxu1 %vm216_vm1, %v195_v20  ;;  %692 = vmatpush3.msra.mxu0 %v373_v21 }
  0x3c   : > { %693 = vmatprep.subr.mxu0 %v896_v0  ;;  %709 = vmatprep.mubr.msk.f32.mxu0 %vm897_vm0, %v896_v0 }
  0x3d   : > { %694 = vmatpush3.msra.mxu0 %v372_v22 }
  0x3e   : > { %695 = vmatprep.subr.mxu0 %v896_v0 }
  0x3f   : > { %696 = vmatpush3.msra.mxu0 %v371_v23 }
  0x40   : > { %697 = vmatprep.subr.mxu0 %v896_v0 }
  0x41   : > { %698 = vmatpush3.msra.mxu0 %v370_v24 }
  0x42   : > { %699 = vmatprep.subr.mxu0 %v896_v0 }
  0x43   : > { %700 = vmatpush3.msra.mxu0 %v369_v25 }
  0x44   : > { %701 = vmatprep.subr.mxu0 %v896_v0 }
  0x45   : > { %702 = vmatpush3.msra.mxu0 %v368_v26 }
  0x46   : > { %703 = vmatprep.subr.mxu0 %v896_v0 }
  0x47   : > { %704 = vmatpush3.msra.mxu0 %v367_v27 }
  0x48   : > { %705 = vmatprep.subr.mxu0 %v896_v0 }
  0x49   : > { %706 = vmatpush3.msra.mxu0 %v366_v28 }
  0x4a   : > { %707 = vmatprep.subr.mxu0 %v896_v0 }
  0x4b   : > { %708 = vmatpush3.msra.mxu0 %v365_v29 }
  0x4c   : > { %710 = vmatmul.mubr.msk.f32.vlgmr.msra.gmra.mxu0 %vm216_vm1, %v363_v30 }
  0xfa   : > { %v286_v31 = vpop.f32.mrf.mxu0 }
  0xfb   : > { %v359_v32 = vpop.f32.mrf.mxu1 }
  0xfc   : > { %v669_v33 = vpop.f32.mrf.mxu0  ;;  %v360_v35 = vadd.f32 %v359_v32, %v286_v31 }
  0xfd   : > { %v690_v34 = vpop.f32.mrf.mxu1 }
 0x10c   : > { %v443_v36 = vpop.f32.mrf.mxu0 }
 0x10d   : > { %v447_v37 = vadd.f32 %v443_v36, %v360_v35 }
 0x10e   : > { %v711_v38 = vpop.f32.mrf.mxu0 }
 0x10f   : > { %v449_v39 = vrot.slane %v447_v37, 4  ;;  %v456_v40 = vmul.f32 %v447_v37, %v447_v37  ;;  %448 = vst [vmem:[%s182_s19] sm:$0xff] %v447_v37 }
 0x110   : > { %810 = shalt.err (!%p807_p0)
}
 0x111   : > { %s811_s5 = scalar_lea.hbm %s1040_s26, 128  ;;  %s815_s8 = scalar_lea.hbm %s1102_s2, 512 }
 0x112   : > { %p812_p1 = scmp.ne.s32.totalorder %s1040_s26, %s811_s5  ;;  %p816_p4 = scmp.lt.s32.totalorder %s1040_s26, %s1102_s2 }
 0x113   : > { %p817_p7 = scmp.lt.s32.totalorder %s815_s8, %s811_s5 }
 0x114   : > { %p813_p2 = pnand %p812_p1, %p958_p5 }
 0x115   : > { %p818_p6 = por %p817_p7, %p816_p4 }
 0x116   : > { %p814_p3 = pneg %p813_p2 }
 0x118   : > { %p819_p8 = pnand %p818_p6, %p814_p3 }
 0x11a   : > { %822 = shalt.err (!%p819_p8)
}
 0x11b   : > { %716 = dma.vmem_to_hbm [thread:$0]  (%p958_p5), %s1042_s20, 128, %s1040_s26, %s465_s27   ;;  %v450_v41 = vadd.f32 %v449_v39, %v447_v37  ;;  %v457_v42 = vrot.slane %v456_v40, 4 }
 0x11c   : > { %s606_s17 = sshll.u32 %s1033_s10, 1  ;;  %s615_s19 = sshll.u32 %s941_s16, 5 }
 0x11d   : > { %v451_v43 = vrot.slane %v450_v41, 2  ;;  %v458_v44 = vadd.f32 %v457_v42, %v456_v40  ;;  %s189_s24 = scalar_lea.vmem [#allocation6], %s606_s17  ;;  %s494_s26 = scalar_lea.hbm %s1103_s3, %s615_s19 }
 0x11e   : > { %s496_s25 = sshll.u32 %s189_s24, 4  ;;  %s470_s27 = scalar_lea.sflag [#allocation7], %s1033_s10  ;;  %s497_s25 = int_to_ptr.vmem [resolvable:$true] %s496_s25 }
 0x11f   : > { %v452_v45 = vadd.f32 %v451_v43, %v450_v41  ;;  %v459_v46 = vrot.slane %v458_v44, 2  ;;  %s823_s29 = scalar_lea.vmem %s497_s25, 32  ;;  %s899_s30 = smov [#allocation6]  }
 0x120   : > { %p824_p9 = scmp.ne.s32.totalorder %s497_s25, %s823_s29  ;;  %s827_s16 = sshll.u32 %s899_s30, 4  ;;  %s828_s16 = int_to_ptr.vmem [resolvable:$false] %s827_s16 }
 0x121   : > { %v453_v47 = vrot.slane %v452_v45, 1  ;;  %v460_v48 = vadd.f32 %v459_v46, %v458_v44  ;;  %s829_s4 = scalar_lea.vmem %s828_s16, 64  ;;  %p830_p12 = scmp.lt.s32.totalorder %s497_s25, %s828_s16 }
 0x122   : > { %p825_p10 = pnand %p824_p9, %p958_p5  ;;  %p831_p13 = scmp.lt.s32.totalorder %s829_s4, %s823_s29 }
 0x123   : > { %v454_v49 = vadd.f32 %v453_v47, %v452_v45  ;;  %v461_v50 = vrot.slane %v460_v48, 1 }
 0x124   : > { %p826_p11 = pneg %p825_p10  ;;  %p832_p0 = por %p831_p13, %p830_p12 }
 0x125   : > { %455 = vst [vmem:[%s189_s24] sm:$0x1] %v454_v49  ;;  %v462_v51 = vadd.f32 %v461_v50, %v460_v48 }
 0x126   : > { %p833_p1 = pnand %p832_p0, %p826_p11 }
 0x127   : > { %463 = vst [vmem:[%s189_s24 + $0x1] sm:$0x1] %v462_v51 }
 0x128   : > { %836 = shalt.err (!%p833_p1)
}
 0x129   : > { %s837_s5 = scalar_lea.hbm %s494_s26, 32  ;;  %s841_s7 = scalar_lea.hbm %s1103_s3, 128 }
 0x12a   : > { %p838_p2 = scmp.ne.s32.totalorder %s494_s26, %s837_s5  ;;  %p842_p7 = scmp.lt.s32.totalorder %s494_s26, %s1103_s3 }
 0x12b   : > { %p843_p6 = scmp.lt.s32.totalorder %s841_s7, %s837_s5 }
 0x12c   : > { %p839_p3 = pnand %p838_p2, %p958_p5 }
 0x12d   : > { %p844_p8 = por %p843_p6, %p842_p7 }
 0x12e   : > { %p840_p4 = pneg %p839_p3 }
 0x130   : > { %p845_p9 = pnand %p844_p8, %p840_p4 }
 0x132   : > { %848 = shalt.err (!%p845_p9)
}
 0x133   : > { %717 = dma.vmem_to_hbm [thread:$0]  (%p958_p5), %s497_s25, 32, %s494_s26, %s470_s27  }
 0x134 PF: > { %p733_p10 = scmp.ge.s32.totalorder %s891_s15, 2  ;;  %s508_s11 = sand.u32 1, %s879_s12  }
 0x135   : > { %p1107_p11 = scmp.ne.s32.totalorder %s1105_s23, 0  ;;  %s509_s17 = scalar_lea.sflag [#allocation4], %s508_s11 }
 0x137   : > { %p725_p12 = pnand %p733_p10, %p1107_p11 }
 0x139   : > { %p726_p13 = pneg %p725_p12 }
 0x13b   : > { %870 = dma.done.wait (%p726_p13), %s509_s17, 128  }
 0x13c   : > { %872 = vsyncadd (%p726_p13), %s509_s17, 4294967168  ;;  %s518_s19 = scalar_lea.sflag [#allocation7], %s508_s11 }
 0x13d   : > { %874 = dma.done.wait (%p726_p13), %s518_s19, 32  }
 0x13e   : > { %876 = vsyncadd (%p726_p13), %s518_s19, 4294967264  ;;  %p18_p5 = scmp.ge.s32.totalorder %s945_s18, 6   ;;  %s1108_s12 = smov %s883_s13 }
 0x13f   : > { %s1109_s13 = smov %s887_s14  ;;  %s1110_s14 = smov %s956_s21 }
 0x140   : > { %s1111_s15 = smov %s945_s18  ;;  %20 = sbr.rel (!%p18_p5) target bundleno = 6 (0x6), region = 87 }
 0x145   :  { %523 = vsyncpa [#allocation3], 1 }
 0x146   :  { %525 = vsyncpa [#allocation3 + $0x1], 1 }
 0x147   :  { %526 = vsyncpa [#allocation4], 1 }
 0x148   :  { %528 = vsyncpa [#allocation4 + $0x1], 1 }
 0x149   :  { %529 = vsyncpa [#allocation7], 1 }
 0x14a   :  { %531 = vsyncpa [#allocation7 + $0x1], 1 }

</bundles_post_ra>
